<compile_context>
chip_gen: v6e
topology: v6e:2x2x1
jax: 0.10.0
libtpu: 0.0.40
codegen_flags: <defaults>
</compile_context>

<pallas_src>
import functools

import jax
import jax.numpy as jnp
from jax.experimental import pallas as pl
from jax.experimental.pallas import tpu as pltpu


def _round_up(x, m):
    return (x + m - 1) // m * m


def _vmem_capacity_bytes():
    """Best-effort VMEM capacity query; falls back to the smallest (v7x) size."""
    try:
        return int(pltpu.get_tpu_info().vmem_capacity_bytes)
    except Exception:
        return 64 * 1024 * 1024


def _aspp_kernel(x_ref, w_ref, sb_ref, o_ref, *, K, dil, TH, Wo):
    """Grid = (batch n, cout tile c, row tile r).

    x_ref:  (1, Hp, Wp, Cin_p)  whole padded image of batch n (compute dtype);
            block index depends only on n -> DMAed once per image.
    w_ref:  (K*K, Cin_p, TC)    conv-weight slice for this Cout tile
    sb_ref: (2, TC)             row 0 = fused BN scale, row 1 = fused BN bias (f32)
    o_ref:  (1, TH, Wo, TC)
    """
    cin = x_ref.shape[-1]
    tc = w_ref.shape[-1]
    r = pl.program_id(2)
    row0 = pl.multiple_of(r * TH, TH)

    # Dilated conv = K*K back-to-back MXU matmuls into one f32 accumulator.
    # TH is chosen in the wrapper so acc (TH*Wo, TC) stays ~vreg-resident.
    # NOTE: kw*dil is not 8-aligned for general dilations; for thin channels
    # the wrapper folds taps (K==1 here, offset-0 slices).  For Cin_p >= 128
    # the relayout of the misaligned slice hides under the deep matmul; an
    # XLU pltpu.roll variant is a possible further optimization.
    acc = None
    for kh in range(K):
        for kw in range(K):
            patch = x_ref[0, pl.ds(row0 + kh * dil, TH),
                          kw * dil:kw * dil + Wo, :]
            contrib = jnp.dot(patch.reshape(TH * Wo, cin),
                              w_ref[kh * K + kw],
                              preferred_element_type=jnp.float32)
            acc = contrib if acc is None else acc + contrib

    # Fused BatchNorm (inference) + ReLU, then one lane-dense store.
    y = acc * sb_ref[0, :] + sb_ref[1, :]
    y = jnp.maximum(y, 0.0)
    o_ref[...] = y.reshape(1, TH, Wo, tc).astype(o_ref.dtype)


def aspp_module_forward(x_nhwc, weight, bn_gamma, bn_beta, bn_mean, bn_var, *,
                        kernel_size, padding, dilation, eps=1e-5,
                        block_h=None, block_cout=None, fold_taps=None,
                        image_buffers=None, weight_buffers=None,
                        compute_dtype=jnp.bfloat16, vmem_limit_bytes=None):
    """x_nhwc: (N, H, W, Cin); weight: (K, K, Cin, Cout) (HWIO). Returns NHWC."""
    N, H, W, Cin = x_nhwc.shape
    K = kernel_size
    dil = dilation
    Cout = weight.shape[-1]

    # True output spatial extent (stride = 1).
    Ho_true = H + 2 * padding - dil * (K - 1)
    Wo_true = W + 2 * padding - dil * (K - 1)

    # ---- Thin-channel path: fold the K*K dilated taps into the contraction
    # dim (im2col) so we do one well-filled matmul instead of K*K matmuls that
    # each pad Cin up to 128.  Gated so the folded contraction stays <= 256
    # lanes (HBM blowup bounded, MXU padding waste dominates otherwise).
    if fold_taps is None:
        fold_taps = (K > 1) and (K * K * Cin <= 256)
    if fold_taps:
        xp = jnp.pad(x_nhwc, ((0, 0), (padding, padding),
                              (padding, padding), (0, 0)))
        patches = [xp[:, kh * dil:kh * dil + Ho_true,
                      kw * dil:kw * dil + Wo_true, :]
                   for kh in range(K) for kw in range(K)]
        x_eff = jnp.concatenate(patches, axis=-1)           # (N, Ho, Wo, K*K*Cin)
        # HWIO reshape order (kh, kw, cin) matches the concatenation order.
        w_eff = weight.reshape(1, 1, K * K * Cin, Cout)
        K_eff, pad_eff, dil_eff = 1, 0, 1
    else:
        x_eff, w_eff = x_nhwc, weight
        K_eff, pad_eff, dil_eff = K, padding, dil

    _, He, We, Ce = x_eff.shape
    Ho = He + 2 * pad_eff - dil_eff * (K_eff - 1)   # == Ho_true
    Wo = We + 2 * pad_eff - dil_eff * (K_eff - 1)   # == Wo_true

    # ---- Tiling: lane-dense channels, sublane-aligned width, bounded M tile.
    Wo_p = _round_up(Wo, 8)
    Cin_p = _round_up(Ce, 128)
    Cout_p = _round_up(Cout, 128)
    if block_cout is None:
        TC = 256 if (Cout_p % 256 == 0) else 128    # fill 256-wide MXUs (v6e/v7x)
    else:
        TC = min(block_cout, Cout_p)
    assert Cout_p % TC == 0 and TC % 128 == 0
    if block_h is None:
        TH = max(1, min(Ho, 256 // Wo_p))           # keep acc ~<= 256 rows (vreg-resident)
        TH = max(TH, 1)
    else:
        TH = block_h
    Ho_p = _round_up(Ho, TH)

    # ---- Glue: conv zero-padding + alignment padding + channel padding.
    # (Feed bf16 upstream to avoid the extra cast pass for mem-bound configs.)
    x_pad = jnp.pad(
        x_eff,
        ((0, 0),
         (pad_eff, pad_eff + (Ho_p - Ho)),
         (pad_eff, pad_eff + (Wo_p - Wo)),
         (0, Cin_p - Ce)),
    ).astype(compute_dtype)
    Hp, Wp = x_pad.shape[1], x_pad.shape[2]

    # (K,K,Cin,Cout) -> (K*K, Cin_p, Cout_p) single weight slab.
    # NOTE: on v7x an fp8 weight path (MXU bf16+fp8) would halve this footprint.
    w_pad = jnp.pad(w_eff, ((0, 0), (0, 0), (0, Cin_p - Ce), (0, Cout_p - Cout)))
    w_pad = w_pad.reshape(K_eff * K_eff, Cin_p, Cout_p).astype(compute_dtype)

    # Fold BatchNorm (eval mode, running stats) into scale/bias; padded output
    # channels get scale = bias = 0 so padded lanes stay exactly zero.
    scale = bn_gamma.astype(jnp.float32) / jnp.sqrt(bn_var.astype(jnp.float32) + eps)
    bias = bn_beta.astype(jnp.float32) - bn_mean.astype(jnp.float32) * scale
    sb = jnp.stack([jnp.pad(scale, (0, Cout_p - Cout)),
                    jnp.pad(bias, (0, Cout_p - Cout))], axis=0)  # (2, Cout_p) f32

    # ---- VMEM accounting -> buffering choices + explicit vmem limit.
    in_bs = jnp.dtype(compute_dtype).itemsize
    out_bs = jnp.dtype(x_nhwc.dtype).itemsize
    image_bytes = Hp * Wp * Cin_p * in_bs
    weight_bytes = K_eff * K_eff * Cin_p * TC * in_bs
    out_bytes = TH * Wo_p * TC * out_bs
    sb_bytes = 2 * TC * 4
    capacity = _vmem_capacity_bytes()

    if image_buffers is None:
        # Image block index depends only on n -> prefetching the next image only
        # helps once per (Cout/TC)*(Ho/TH) steps; single-buffer it whenever its
        # VMEM cost is non-trivial.  Tiny blocks keep the (free) default.
        image_buffers = 1 if image_bytes > 4 * 1024 * 1024 else 2
    if weight_buffers is None:
        tight = (image_buffers * image_bytes + 2 * weight_bytes
                 + 2 * out_bytes + 2 * sb_bytes) > int(0.75 * capacity)
        weight_buffers = 1 if tight else 2

    if vmem_limit_bytes is None:
        need = (image_buffers * image_bytes + weight_buffers * weight_bytes
                + 2 * out_bytes + 2 * sb_bytes
                + TH * Wo_p * TC * 4)               # f32 accumulator spill headroom
        vmem_limit_bytes = min(max(int(need * 1.25) + (2 << 20), 32 << 20), 128 << 20)

    def _spec(shape, index_map, buffers):
        if buffers == 2:                            # pipeline default
            return pl.BlockSpec(shape, index_map)
        return pl.BlockSpec(shape, index_map, pipeline_mode=pl.Buffered(buffers))

    kernel = functools.partial(_aspp_kernel, K=K_eff, dil=dil_eff, TH=TH, Wo=Wo_p)

    # Rows innermost so weight/scale/bias blocks stay resident across rows; the
    # image block index ignores (c, r) so it is fetched once per n.  Every
    # (n, c, r) writes a distinct output block -> all axes are "parallel".
    grid = (N, Cout_p // TC, Ho_p // TH)
    # NOTE: for very large ASPP inputs (e.g. Cin=2048, dilation 18, H,W >~ 72)
    # even the single-buffered padded image exceeds v7x's 64 MiB VMEM; a
    # halo-row manual-DMA variant (memory_space=pl.ANY + make_async_copy over
    # (TH + (K-1)*dil)-row strips, TH raised to 16-32) would be needed there.
    out = pl.pallas_call(
        kernel,
        out_shape=jax.ShapeDtypeStruct((N, Ho_p, Wo_p, Cout_p), x_nhwc.dtype),
        grid_spec=pltpu.PrefetchScalarGridSpec(
            num_scalar_prefetch=0,
            grid=grid,
            in_specs=[
                _spec((1, Hp, Wp, Cin_p), lambda n, c, r: (n, 0, 0, 0),
                      image_buffers),
                _spec((K_eff * K_eff, Cin_p, TC), lambda n, c, r: (0, 0, c),
                      weight_buffers),
                pl.BlockSpec((2, TC), lambda n, c, r: (0, c)),
            ],
            out_specs=pl.BlockSpec((1, TH, Wo_p, TC),
                                   lambda n, c, r: (n, r, 0, c)),
        ),
        compiler_params=pltpu.CompilerParams(
            dimension_semantics=("parallel", "parallel", "parallel"),
            vmem_limit_bytes=vmem_limit_bytes),
    )(x_pad, w_pad, sb)

    # Strip alignment padding back to the true output extent / channels.
    return out[:, :Ho_true, :Wo_true, :Cout]


def reference_forward(x_nhwc, weight, bn_gamma, bn_beta, bn_mean, bn_var, *,
                      kernel_size, padding, dilation, eps=1e-5):
    y = jax.lax.conv_general_dilated(
        x_nhwc, weight,
        window_strides=(1, 1),
        padding=((padding, padding), (padding, padding)),
        rhs_dilation=(dilation, dilation),
        dimension_numbers=("NHWC", "HWIO", "NHWC"),
        preferred_element_type=jnp.float32,
    )
    scale = bn_gamma / jnp.sqrt(bn_var + eps)
    bias = bn_beta - bn_mean * scale
    y = y * scale + bias
    return jnp.maximum(y, 0.0)


if __name__ == "__main__":
    # Small shapes consistent with the module (NCHW input -> NHWC for the kernel).
    N, Cin, H, W = 2, 4, 16, 16
    Cout = 8
    kernel_size, padding, dilation = 3, 2, 2  # "same" atrous conv

    key = jax.random.PRNGKey(0)
    kx, kw = jax.random.split(key)

    x_nchw = jax.random.normal(kx, (N, Cin, H, W), dtype=jnp.float32)
    x_nhwc = jnp.transpose(x_nchw, (0, 2, 3, 1))

    # Conv weight: kaiming_normal_ (fan_in = Cin*K*K, gain=sqrt(2)), deterministic.
    fan_in = Cin * kernel_size * kernel_size
    std = (2.0 / fan_in) ** 0.5
    # PyTorch layout (Cout, Cin, K, K) -> HWIO (K, K, Cin, Cout).
    w_oikk = jax.random.normal(kw, (Cout, Cin, kernel_size, kernel_size),
                               dtype=jnp.float32) * std
    w_hwio = jnp.transpose(w_oikk, (2, 3, 1, 0))

    # BatchNorm params at init: weight=1, bias=0, running_mean=0, running_var=1.
    bn_gamma = jnp.ones((Cout,), jnp.float32)
    bn_beta = jnp.zeros((Cout,), jnp.float32)
    bn_mean = jnp.zeros((Cout,), jnp.float32)
    bn_var = jnp.ones((Cout,), jnp.float32)

    run = functools.partial(
        aspp_module_forward,
        kernel_size=kernel_size, padding=padding, dilation=dilation)

    # Thin-channel folded-tap path (auto: K*K*Cin = 36 <= 256).
    out_folded = jax.block_until_ready(
        run(x_nhwc, w_hwio, bn_gamma, bn_beta, bn_mean, bn_var))
    # General K*K-tap path (what large-Cin ASPP branches use).
    out_general = jax.block_until_ready(
        run(x_nhwc, w_hwio, bn_gamma, bn_beta, bn_mean, bn_var, fold_taps=False))

    # Tight check vs a reference fed the same bf16-cast operands (f32 accum).
    ref_bf16 = reference_forward(
        x_nhwc.astype(jnp.bfloat16), w_hwio.astype(jnp.bfloat16),
        bn_gamma, bn_beta, bn_mean, bn_var,
        kernel_size=kernel_size, padding=padding, dilation=dilation)
    # Loose sanity check vs the full-f32 reference (bf16 rounding slack).
    ref_f32 = reference_forward(
        x_nhwc, w_hwio, bn_gamma, bn_beta, bn_mean, bn_var,
        kernel_size=kernel_size, padding=padding, dilation=dilation)

    for out in (out_folded, out_general):
        assert out.shape == (N, H, W, Cout)
        assert jnp.allclose(out, ref_bf16, atol=2e-3, rtol=2e-3)
        assert jnp.allclose(out, ref_f32, atol=1e-1, rtol=1e-1)
    assert jnp.allclose(out_folded, out_general, atol=2e-3, rtol=2e-3)

    print("KERNEL_OK")
</pallas_src>

<mosaic_0001>
module attributes {stable_mosaic.version = 11 : i64} {
  func.func @_aspp_kernel(%arg0: i32, %arg1: i32, %arg2: i32, %arg3: memref<1x16x16x128xbf16, #tpu.memory_space<vmem>>, %arg4: memref<1x128x128xbf16, #tpu.memory_space<vmem>>, %arg5: memref<2x128xf32, #tpu.memory_space<vmem>>, %arg6: memref<1x16x16x128xf32, #tpu.memory_space<vmem>>) attributes {dimension_semantics = [#tpu.dimension_semantics<parallel>, #tpu.dimension_semantics<parallel>, #tpu.dimension_semantics<parallel>], iteration_bounds = array<i64: 2, 1, 1>, scalar_prefetch = 0 : i64, scratch_operands = 0 : i64, tpu.core_type = #tpu.core_type<tc>, window_params = [{transform_indices = @transform_0, window_bounds = array<i64: 1, 16, 16, 128>}, {transform_indices = @transform_1, window_bounds = array<i64: 1, 128, 128>}, {transform_indices = @transform_2, window_bounds = array<i64: 2, 128>}, {transform_indices = @transform_3, window_bounds = array<i64: 1, 16, 16, 128>}]} {
    %c16_i32 = arith.constant 16 : i32
    %0 = arith.muli %arg2, %c16_i32 : i32
    %1 = tpu.assume_multiple %0, 16 : i32
    %c0_i32 = arith.constant 0 : i32
    %2 = arith.addi %1, %c0_i32 : i32
    %c0 = arith.constant 0 : index
    %3 = arith.index_cast %2 : i32 to index
    %c0_0 = arith.constant 0 : index
    %c0_1 = arith.constant 0 : index
    %4 = vector.load %arg3[%c0, %3, %c0_0, %c0_1] : memref<1x16x16x128xbf16, #tpu.memory_space<vmem>>, vector<1x16x16x128xbf16>
    %5 = vector.shape_cast %4 : vector<1x16x16x128xbf16> to vector<16x16x128xbf16>
    %6 = vector.shape_cast %5 : vector<16x16x128xbf16> to vector<256x128xbf16>
    %c0_2 = arith.constant 0 : index
    %c0_3 = arith.constant 0 : index
    %c0_4 = arith.constant 0 : index
    %7 = vector.load %arg4[%c0_2, %c0_3, %c0_4] : memref<1x128x128xbf16, #tpu.memory_space<vmem>>, vector<1x128x128xbf16>
    %8 = vector.shape_cast %7 : vector<1x128x128xbf16> to vector<128x128xbf16>
    %cst = arith.constant dense<0.000000e+00> : vector<256x128xf32>
    %9 = tpu.matmul %6, %8, %cst {dimension_numbers = #tpu.dot_dimension_numbers<[1], [0], [0], [1], [0, 0, 1, 1], [], []>} : vector<256x128xbf16>, vector<128x128xbf16>, vector<256x128xf32> -> vector<256x128xf32>
    %c0_5 = arith.constant 0 : index
    %c0_6 = arith.constant 0 : index
    %10 = vector.load %arg5[%c0_5, %c0_6] : memref<2x128xf32, #tpu.memory_space<vmem>>, vector<1x128xf32>
    %11 = vector.shape_cast %10 : vector<1x128xf32> to vector<128xf32>
    %12 = vector.shape_cast %11 : vector<128xf32> to vector<1x128xf32>
    %13 = vector.broadcast %12 : vector<1x128xf32> to vector<256x128xf32>
    %14 = arith.mulf %9, %13 : vector<256x128xf32>
    %c1 = arith.constant 1 : index
    %c0_7 = arith.constant 0 : index
    %15 = vector.load %arg5[%c1, %c0_7] : memref<2x128xf32, #tpu.memory_space<vmem>>, vector<1x128xf32>
    %16 = vector.shape_cast %15 : vector<1x128xf32> to vector<128xf32>
    %17 = vector.shape_cast %16 : vector<128xf32> to vector<1x128xf32>
    %18 = vector.broadcast %17 : vector<1x128xf32> to vector<256x128xf32>
    %19 = arith.addf %14, %18 : vector<256x128xf32>
    %cst_8 = arith.constant 0.000000e+00 : f32
    %20 = vector.broadcast %cst_8 : f32 to vector<256x128xf32>
    %21 = arith.maximumf %19, %20 : vector<256x128xf32>
    %22 = vector.shape_cast %21 : vector<256x128xf32> to vector<1x16x16x128xf32>
    %c0_9 = arith.constant 0 : index
    %c0_10 = arith.constant 0 : index
    %c0_11 = arith.constant 0 : index
    %c0_12 = arith.constant 0 : index
    %23 = vector.load %arg6[%c0_9, %c0_10, %c0_11, %c0_12] : memref<1x16x16x128xf32, #tpu.memory_space<vmem>>, vector<1x16x16x128xf32>
    tpu.vector_store %arg6[%c0_9, %c0_10, %c0_11, %c0_12], %22 {strides = array<i32>} : memref<1x16x16x128xf32, #tpu.memory_space<vmem>>, vector<1x16x16x128xf32>,
    return
  }
  func.func @transform_0(%arg0: i32, %arg1: i32, %arg2: i32) -> (i32, i32, i32, i32) {
    %c0_i32 = arith.constant 0 : i32
    %c0_i32_0 = arith.constant 0 : i32
    %c0_i32_1 = arith.constant 0 : i32
    %c0_i32_2 = arith.constant 0 : i32
    return %arg0, %c0_i32, %c0_i32_0, %c0_i32_1 : i32, i32, i32, i32
  }
  func.func @transform_1(%arg0: i32, %arg1: i32, %arg2: i32) -> (i32, i32, i32) {
    %c0_i32 = arith.constant 0 : i32
    %c0_i32_0 = arith.constant 0 : i32
    %c0_i32_1 = arith.constant 0 : i32
    return %c0_i32, %c0_i32_0, %arg1 : i32, i32, i32
  }
  func.func @transform_2(%arg0: i32, %arg1: i32, %arg2: i32) -> (i32, i32) {
    %c0_i32 = arith.constant 0 : i32
    %c0_i32_0 = arith.constant 0 : i32
    return %c0_i32, %arg1 : i32, i32
  }
  func.func @transform_3(%arg0: i32, %arg1: i32, %arg2: i32) -> (i32, i32, i32, i32) {
    %c0_i32 = arith.constant 0 : i32
    %c0_i32_0 = arith.constant 0 : i32
    return %arg0, %arg2, %c0_i32, %arg1 : i32, i32, i32, i32
  }
}

</mosaic_0001>

<bundles_post_ra>
// kernel: tpu_custom_call.1
= control target key start
LH: loop header
LB: loop body
LE: loop exit
PB: predicated region body
PF: predicated region fallthrough
CT: control target
= control target key end

     0   :  { %8 = vsyncpa [#allocation3], 0  ;;  %s1600_s0 = inlined_call_operand.hbm [shape: bf16[2,16,16,128], index: 0, kind: input, shape index: {}]   ;;  %s1601_s1 = inlined_call_operand.hbm [shape: bf16[1,128,128], index: 1, kind: input, shape index: {}]   ;;  %s1602_s2 = inlined_call_operand.vmem [shape: f32[2,128], index: 2, kind: input, shape index: {}]   ;;  %s1603_s3 = inlined_call_operand.hbm [shape: f32[2,16,16,128], index: 3, kind: output, shape index: {}]  }
   0x1   :  { %10 = vsyncpa [#allocation3 + $0x1], 0 }
   0x2   :  { %11 = vsyncpa [#allocation6], 0 }
   0x3   :  { %12 = vsyncpa [#allocation4], 0 }
   0x4   :  { %14 = vsyncpa [#allocation4 + $0x1], 0  ;;  %s1285_s12 = smov 0   ;;  %s1287_s13 = smov 0  }
   0x5   :  { %s1289_s14 = smov 0   ;;  %s1291_s15 = smov 0  }
   0x6   :  { %s1293_s16 = smov 0   ;;  %s1295_s17 = smov 0  }
   0x7 LB: > { %s883_s18 = sadd.s32 4294967295, %s1256_s17   ;;  %s884_s19 = sadd.s32 4294967294, %s1256_s17   ;;  %s1256_s17 = sphi %s1295_s17, %s20_s17   ;;  %s1252_s16 = sphi %s1293_s16, %s1625_s16   ;;  %s1248_s15 = sphi %s1291_s15, %s1624_s15   ;;  %s1244_s14 = sphi %s1289_s14, %s1623_s14   ;;  %s1240_s13 = sphi %s1287_s13, %s1622_s13   ;;  %s1236_s12 = sphi %s1285_s12, %s1621_s12  }
   0x8   : > { %p59_p0 = scmp.ne.s32.totalorder %s1240_s13, %s1236_s12  ;;  %p1319_p1 = scmp.eq.s32.totalorder %s883_s18, 0 }
   0x9   : > { %p1323_p2 = scmp.eq.s32.totalorder %s883_s18, 1  ;;  %p145_p3 = scmp.eq.s32.totalorder %s884_s19, 1 }
   0xa   : > { %p1329_p4 = por %p1319_p1, %p59_p0  ;;  %p885_p5 = scmp.ge.s32.totalorder %s1256_s17, 1 }
   0xb   : > { %p1334_p6 = por %p145_p3, %p59_p0  ;;  %p152_p7 = scmp.lt.s32.totalorder %s1256_s17, 3 }
   0xc   : > { %s1609_s22 = scalar_select %p1329_p4, 1, 0 }
   0xd   : > { %s1610_s23 = scalar_select %p1334_p6, 1, 0 }
   0xe   : > { %p1339_p8 = pnand %p885_p5, %p152_p7  ;;  %s1258_s25 = smov [#allocation5]  }
   0xf   : > { %s166_s26 = sshll.u32 %s1258_s25, 4  ;;  %s39_s28 = sadd.s32 1, %s1252_s16  ;;  %s167_s26 = int_to_ptr.vmem [resolvable:$true] %s166_s26 }
  0x10   : > { %p1025_p9 = pneg %p1339_p8  ;;  %s1129_s29 = scalar_lea.vmem %s167_s26, 1024 }
  0x11   : > { %p1130_p13 = scmp.ne.s32.totalorder %s167_s26, %s1129_s29  ;;  %p1137_p5 = scmp.lt.s32.totalorder %s167_s26, %s167_s26 }
  0x12   : > { %p1348_p11 = pnand %p1025_p9, %p1319_p1  ;;  %p1138_p7 = scmp.lt.s32.totalorder %s1129_s29, %s1129_s29 }
  0x14   : > { %p1120_p12 = pneg %p1348_p11  ;;  %p1139_p6 = por %p1138_p7, %p1137_p5 }
  0x16   : > { %p1132_p0 = pnand %p1130_p13, %p1120_p12 }
  0x18   : > { %p1133_p3 = pneg %p1132_p0 }
  0x1a   : > { %p1140_p4 = pnand %p1139_p6, %p1133_p3 }
  0x1c   : > { %1143 = shalt.err (!%p1140_p4)
}
  0x1d   : > { %s1605_s30 = smov 64   ;;  %s1606_s4 = smov 4  }
  0x1e   : > { %1028 = dma.hbm_to_vmem [thread:$0]  (!%p1348_p11), %s1601_s1, 1024, %s167_s26, [#allocation6], %s1605_s30, %s1605_s30, %s1606_s4  }
  0x1f   : > { %p41_p4 = scmp.ge.s32.totalorder %s39_s28, 2  ;;  %s46_s7 = sadd.s32 1, %s1244_s14 }
  0x20   : > { %p53_p6 = scmp.ne.s32.totalorder %s1244_s14, %s1240_s13  ;;  %p54_p9 = scmp.eq.s32.totalorder %s1256_s17, 0 }
  0x21   : > { %s1627_s28 = smov (%p41_p4, %s39_s28), 0  ;;  %p1038_p0 = scmp.lt.s32.totalorder %s1256_s17, 2 }
  0x22   : > { %p1369_p12 = por %p54_p9, %p53_p6  ;;  %p1375_p13 = por %p1323_p2, %p53_p6 }
  0x23   : > { %s43_s10 = ssub.s32 %s1252_s16, %s1627_s28  ;;  %s187_s11 = sand.u32 1, %s1244_s14  }
  0x24   : > { %p44_p11 = scmp.eq.s32.totalorder %s43_s10, 0  ;;  %s889_s18 = sshll.u32 %s187_s11, 7 }
  0x25   : > { %s927_s25 = sshll.u32 %s1252_s16, 11  ;;  %s191_s5 = scalar_lea.vmem [#allocation2], %s889_s18 }
  0x26   : > { %s1384_s19 = scalar_select %p44_p11, %s1244_s14, %s46_s7  }
  0x27   : > { %s197_s29 = scalar_lea.hbm %s1600_s0, %s927_s25  ;;  %s198_s6 = sshll.u32 %s191_s5, 4  ;;  %s199_s6 = int_to_ptr.vmem [resolvable:$true] %s198_s6 }
  0x28   : > { %p1392_p2 = pnand %p1038_p0, %p1369_p12  ;;  %s188_s30 = scalar_lea.sflag [#allocation3], %s187_s11 }
  0x29   : > { %s1157_s10 = scalar_lea.vmem %s199_s6, 2048  ;;  %s1261_s7 = smov [#allocation2]  }
  0x2a   : > { %p1146_p3 = pneg %p1392_p2  ;;  %p1158_p5 = scmp.ne.s32.totalorder %s199_s6, %s1157_s10 }
  0x2b   : > { %s1162_s4 = sshll.u32 %s1261_s7, 4  ;;  %s1163_s4 = int_to_ptr.vmem [resolvable:$false] %s1162_s4 }
  0x2c   : > { %p1160_p7 = pnand %p1158_p5, %p1146_p3  ;;  %s1164_s25 = scalar_lea.vmem %s1163_s4, 4096 }
  0x2d   : > { %p1165_p6 = scmp.lt.s32.totalorder %s199_s6, %s1163_s4  ;;  %p1166_p9 = scmp.lt.s32.totalorder %s1164_s25, %s1157_s10 }
  0x2e   : > { %p1161_p4 = pneg %p1160_p7 }
  0x2f   : > { %p1167_p11 = por %p1166_p9, %p1165_p6 }
  0x31   : > { %p1168_p10 = pnand %p1167_p11, %p1161_p4 }
  0x33   : > { %1171 = shalt.err (!%p1168_p10)
}
  0x34   : > { %s1616_s8 = smov 4   ;;  %s1617_s18 = smov 64  }
  0x35   : > { %1032 = dma.hbm_to_vmem [thread:$0]  (!%p1392_p2), %s197_s29, 2048, %s199_s6, %s188_s30, %s1617_s18, %s1617_s18, %s1616_s8  }
  0x36   : > { %210 = sbr.rel (%p1339_p8) target bundleno = 338 (0x152), region = 32  ;;  %s1406_s11 = sand.u32 (!%p1339_p8), 1, %s1240_s13  }
  0x37   : > { %s893_s4 = sshll.u32 (!%p1339_p8), %s1406_s11, 7  ;;  %s213_s26 = scalar_lea.sflag (!%p1339_p8), [#allocation3], %s1406_s11 }
  0x38   : > { %s1410_s27 = scalar_lea.vmem (!%p1339_p8), [#allocation2], %s893_s4  ;;  %p1618_p10 = scmp.ne.s32.totalorder (!%p1339_p8), %s1609_s22, 0 }
  0x3b   : > { %1223 = dma.done.wait (%p1618_p10), %s213_s26, 2048  }
  0x3c   : > { %1225 = vsyncadd (%p1618_p10), %s213_s26, 4294965248 }
  0x3d   : > { %1227 = dma.done.wait (%p1319_p1), [#allocation6], 1024  }
  0x3e   : > { %1229 = vsyncadd (%p1319_p1), [#allocation6], 4294966272  ;;  %v1094_v0 = vld [vmem:[#allocation5 + $0x38] sm:$0xff]   ;;  %v1095_v1 = vld [vmem:[#allocation5 + $0x30] sm:$0xff]   ;;  %s895_s29 = sshll.u32 %s1406_s11, 8  ;;  %s928_s6 = sshll.u32 %s1248_s15, 12 }
  0x3f   : > { %953 = vmatprep.subr.bf16.mxu0 %v1094_v0  ;;  %1001 = vmatprep.subr.bf16.mxu1 %v1094_v0  ;;  %v1096_v2 = vld [vmem:[#allocation5 + $0x28] sm:$0xff]   ;;  %v1097_v3 = vld [vmem:[#allocation5 + $0x20] sm:$0xff]   ;;  %v1098_v6 = vld [vmem:[#allocation5 + $0x18] sm:$0xff]   ;;  %s1457_s5 = scalar_lea.vmem [#allocation7], %s895_s29  ;;  %s1546_s15 = scalar_lea.hbm %s1603_s3, %s928_s6 }
  0x40   : > { %954 = vmatpush3.bf16.msra.mxu0 %v1094_v0  ;;  %1009 = vmatpush3.bf16.msra.mxu1 %v1094_v0  ;;  %v1102_v4 = vld [vmem:[%s1410_s27] sm:$0xff]   ;;  %v1099_v7 = vld [vmem:[#allocation5 + $0x10] sm:$0xff]   ;;  %v1100_v8 = vld [vmem:[#allocation5 + $0x8] sm:$0xff]   ;;  %s766_s21 = sshll.u32 %s1457_s5, 4  ;;  %s749_s25 = scalar_lea.sflag [#allocation4], %s1406_s11  ;;  %s1548_s21 = int_to_ptr.vmem [resolvable:$true] %s766_s21 }
  0x41   : > { %955 = vmatprep.subr.bf16.mxu0 %v1095_v1  ;;  %1002 = vmatprep.subr.bf16.mxu1 %v1095_v1  ;;  %v1103_v5 = vld [vmem:[%s1410_s27 + $0x40] sm:$0xff]   ;;  %v1104_v10 = vld [vmem:[%s1410_s27 + $0x8] sm:$0xff]   ;;  %v1106_v12 = vld [vmem:[%s1410_s27 + $0x10] sm:$0xff]   ;;  %s1172_s8 = scalar_lea.vmem %s1548_s21, 4096  ;;  %s1262_s18 = smov [#allocation7]  }
  0x42   : > { %969 = vmatprep.mubr.bf16.mxu0 %v1102_v4  ;;  %985 = vmatprep.mubr.bf16.mxu1 %v1103_v5  ;;  %v1101_v9 = vld [vmem:[#allocation5] sm:$0xff]   ;;  %v1105_v11 = vld [vmem:[%s1410_s27 + $0x48] sm:$0xff]   ;;  %v1107_v13 = vld [vmem:[%s1410_s27 + $0x50] sm:$0xff]   ;;  %p1173_p1 = scmp.ne.s32.totalorder %s1548_s21, %s1172_s8  ;;  %s1176_s4 = sshll.u32 %s1262_s18, 4  ;;  %s1177_s4 = int_to_ptr.vmem [resolvable:$false] %s1176_s4 }
  0x43   : > { %v1108_v14 = vld [vmem:[%s1410_s27 + $0x18] sm:$0xff]   ;;  %v1110_v16 = vld [vmem:[%s1410_s27 + $0x20] sm:$0xff]   ;;  %v1112_v18 = vld [vmem:[%s1410_s27 + $0x28] sm:$0xff]   ;;  %s1178_s26 = scalar_lea.vmem %s1177_s4, 8192  ;;  %p1179_p0 = scmp.lt.s32.totalorder %s1548_s21, %s1177_s4 }
  0x44   : > { %956 = vmatpush3.bf16.msra.mxu0 %v1095_v1  ;;  %1010 = vmatpush3.bf16.msra.mxu1 %v1095_v1  ;;  %v1109_v15 = vld [vmem:[%s1410_s27 + $0x58] sm:$0xff]   ;;  %v1111_v17 = vld [vmem:[%s1410_s27 + $0x60] sm:$0xff]   ;;  %v1113_v19 = vld [vmem:[%s1410_s27 + $0x68] sm:$0xff]   ;;  %p1174_p8 = pnand %p1173_p1, %p1375_p13  ;;  %p1180_p2 = scmp.lt.s32.totalorder %s1178_s26, %s1172_s8 }
  0x45   : > { %957 = vmatprep.subr.bf16.mxu0 %v1096_v2  ;;  %1003 = vmatprep.subr.bf16.mxu1 %v1096_v2  ;;  %v1114_v20 = vld [vmem:[%s1410_s27 + $0x30] sm:$0xff]   ;;  %v1116_v22 = vld [vmem:[%s1410_s27 + $0x38] sm:$0xff]   ;;  %v1439_v24 = vld [vmem:[%s1602_s2] ss:$0 sm:$0xff] }
  0x46   : > { %v1115_v21 = vld [vmem:[%s1410_s27 + $0x70] sm:$0xff]   ;;  %v1117_v23 = vld [vmem:[%s1410_s27 + $0x78] sm:$0xff]   ;;  %v1444_v26 = vld [vmem:[%s1602_s2 + $0x1] ss:$0 sm:$0xff]  ;;  %p1175_p12 = pneg %p1174_p8  ;;  %p1181_p3 = por %p1180_p2, %p1179_p0 }
  0x48   : > { %958 = vmatpush3.bf16.msra.mxu0 %v1096_v2  ;;  %1011 = vmatpush3.bf16.msra.mxu1 %v1096_v2  ;;  %p1182_p5 = pnand %p1181_p3, %p1175_p12 }
  0x49   : > { %959 = vmatprep.subr.bf16.mxu0 %v1097_v3  ;;  %1004 = vmatprep.subr.bf16.mxu1 %v1097_v3 }
  0x4c   : > { %960 = vmatpush3.bf16.msra.mxu0 %v1097_v3  ;;  %1012 = vmatpush3.bf16.msra.mxu1 %v1097_v3 }
  0x4d   : > { %961 = vmatprep.subr.bf16.mxu0 %v1098_v6  ;;  %1005 = vmatprep.subr.bf16.mxu1 %v1098_v6 }
  0x50   : > { %962 = vmatpush3.bf16.msra.mxu0 %v1098_v6  ;;  %1013 = vmatpush3.bf16.msra.mxu1 %v1098_v6 }
  0x51   : > { %963 = vmatprep.subr.bf16.mxu0 %v1099_v7  ;;  %1006 = vmatprep.subr.bf16.mxu1 %v1099_v7 }
  0x54   : > { %964 = vmatpush3.bf16.msra.mxu0 %v1099_v7  ;;  %1014 = vmatpush3.bf16.msra.mxu1 %v1099_v7 }
  0x55   : > { %965 = vmatprep.subr.bf16.mxu0 %v1100_v8  ;;  %1007 = vmatprep.subr.bf16.mxu1 %v1100_v8 }
  0x58   : > { %966 = vmatpush3.bf16.msra.mxu0 %v1100_v8  ;;  %1015 = vmatpush3.bf16.msra.mxu1 %v1100_v8 }
  0x59   : > { %967 = vmatprep.subr.bf16.mxu0 %v1101_v9  ;;  %1008 = vmatprep.subr.bf16.mxu1 %v1101_v9 }
  0x5c   : > { %968 = vmatpush3.bf16.msra.mxu0 %v1101_v9  ;;  %1016 = vmatpush3.bf16.msra.mxu1 %v1101_v9 }
  0x5f   : > { %970 = vmatmul.mubr.bf16.vlgmr.msra.gmra.mxu0 %v1104_v10  ;;  %986 = vmatmul.mubr.bf16.vlgmr.msra.gmra.mxu1 %v1105_v11 }
  0x60   : > { %973 = vmatprep.mubr.bf16.mxu0 %v1106_v12  ;;  %989 = vmatprep.mubr.bf16.mxu1 %v1107_v13 }
  0x67   : > { %974 = vmatmul.mubr.bf16.gmra.mxu0 %v1108_v14  ;;  %990 = vmatmul.mubr.bf16.gmra.mxu1 %v1109_v15 }
  0x68   : > { %977 = vmatprep.mubr.bf16.mxu0 %v1110_v16  ;;  %993 = vmatprep.mubr.bf16.mxu1 %v1111_v17 }
  0x6f   : > { %978 = vmatmul.mubr.bf16.gmra.mxu0 %v1112_v18  ;;  %994 = vmatmul.mubr.bf16.gmra.mxu1 %v1113_v19 }
  0x70   : > { %981 = vmatprep.mubr.bf16.mxu0 %v1114_v20  ;;  %997 = vmatprep.mubr.bf16.mxu1 %v1115_v21 }
  0x77   : > { %982 = vmatmul.mubr.bf16.gmra.mxu0 %v1116_v22  ;;  %998 = vmatmul.mubr.bf16.gmra.mxu1 %v1117_v23 }
 0x11f   : > { %v971_v25 = vpop.f32.mrf.mxu0  ;;  %v987_v27 = vpop.f32.mrf.mxu1 }
 0x120   : > { %v617_v28 = vmul.f32 %v971_v25, %v1439_v24  ;;  %v633_v29 = vmul.f32 %v987_v27, %v1439_v24 }
 0x121   : > { %v483_v30 = vpop.f32.mrf.mxu0  ;;  %v547_v31 = vpop.f32.mrf.mxu1 }
 0x122   : > { %v654_v32 = vadd.f32 %v1444_v26, %v617_v28  ;;  %v670_v33 = vadd.f32 %v1444_v26, %v633_v29  ;;  %v615_v34 = vmul.f32 %v1439_v24, %v483_v30  ;;  %v631_v35 = vmul.f32 %v1439_v24, %v547_v31 }
 0x123   : > { %v972_v36 = vpop.f32.mrf.mxu0  ;;  %v988_v37 = vpop.f32.mrf.mxu1 }
 0x124   : > { %v686_v38 = vmax.f32 %v654_v32, 0.0  ;;  %v702_v39 = vmax.f32 %v670_v33, 0.0  ;;  %v652_v40 = vadd.f32 %v1444_v26, %v615_v34  ;;  %v668_v41 = vadd.f32 %v1444_v26, %v631_v35 }
 0x125   : > { %v618_v42 = vmul.f32 %v972_v36, %v1439_v24  ;;  %v634_v43 = vmul.f32 %v988_v37, %v1439_v24  ;;  %v486_v44 = vpop.f32.mrf.mxu0  ;;  %v550_v45 = vpop.f32.mrf.mxu1 }
 0x126   : > { %718 = vst [vmem:[%s1457_s5 + $0x10] sm:$0xff] %v686_v38  ;;  %734 = vst [vmem:[%s1457_s5 + $0x90] sm:$0xff] %v702_v39  ;;  %v684_v46 = vmax.f32 %v652_v40, 0.0  ;;  %v700_v47 = vmax.f32 %v668_v41, 0.0  ;;  %v616_v48 = vmul.f32 %v1439_v24, %v486_v44  ;;  %v632_v49 = vmul.f32 %v1439_v24, %v550_v45 }
 0x127   : > { %v655_v50 = vadd.f32 %v1444_v26, %v618_v42  ;;  %v671_v51 = vadd.f32 %v1444_v26, %v634_v43  ;;  %v975_v52 = vpop.f32.mrf.mxu0  ;;  %v991_v53 = vpop.f32.mrf.mxu1 }
 0x128   : > { %716 = vst [vmem:[%s1457_s5] sm:$0xff] %v684_v46  ;;  %732 = vst [vmem:[%s1457_s5 + $0x80] sm:$0xff] %v700_v47  ;;  %v653_v54 = vadd.f32 %v1444_v26, %v616_v48  ;;  %v669_v55 = vadd.f32 %v1444_v26, %v632_v49  ;;  %v621_v56 = vmul.f32 %v975_v52, %v1439_v24 }
 0x129   : > { %v637_v57 = vmul.f32 %v991_v53, %v1439_v24  ;;  %v687_v58 = vmax.f32 %v655_v50, 0.0  ;;  %v703_v59 = vmax.f32 %v671_v51, 0.0  ;;  %v499_v60 = vpop.f32.mrf.mxu0  ;;  %v563_v61 = vpop.f32.mrf.mxu1 }
 0x12a   : > { %v685_v62 = vmax.f32 %v653_v54, 0.0  ;;  %v701_v63 = vmax.f32 %v669_v55, 0.0  ;;  %v658_v0 = vadd.f32 %v1444_v26, %v621_v56  ;;  %v619_v2 = vmul.f32 %v1439_v24, %v499_v60 }
 0x12b   : > { %v674_v1 = vadd.f32 %v1444_v26, %v637_v57  ;;  %719 = vst [vmem:[%s1457_s5 + $0x18] sm:$0xff] %v687_v58  ;;  %735 = vst [vmem:[%s1457_s5 + $0x98] sm:$0xff] %v703_v59  ;;  %v635_v3 = vmul.f32 %v1439_v24, %v563_v61  ;;  %v976_v4 = vpop.f32.mrf.mxu0  ;;  %v992_v5 = vpop.f32.mrf.mxu1 }
 0x12c   : > { %717 = vst [vmem:[%s1457_s5 + $0x8] sm:$0xff] %v685_v62  ;;  %733 = vst [vmem:[%s1457_s5 + $0x88] sm:$0xff] %v701_v63  ;;  %v690_v6 = vmax.f32 %v658_v0, 0.0  ;;  %v622_v8 = vmul.f32 %v976_v4, %v1439_v24  ;;  %v638_v9 = vmul.f32 %v992_v5, %v1439_v24  ;;  %v656_v10 = vadd.f32 %v1444_v26, %v619_v2 }
 0x12d   : > { %v706_v7 = vmax.f32 %v674_v1, 0.0  ;;  %v672_v11 = vadd.f32 %v1444_v26, %v635_v3  ;;  %v502_v12 = vpop.f32.mrf.mxu0  ;;  %v566_v13 = vpop.f32.mrf.mxu1 }
 0x12e   : > { %722 = vst [vmem:[%s1457_s5 + $0x30] sm:$0xff] %v690_v6  ;;  %v659_v14 = vadd.f32 %v1444_v26, %v622_v8  ;;  %v675_v15 = vadd.f32 %v1444_v26, %v638_v9  ;;  %v620_v16 = vmul.f32 %v1439_v24, %v502_v12  ;;  %v636_v17 = vmul.f32 %v1439_v24, %v566_v13 }
 0x12f   : > { %738 = vst [vmem:[%s1457_s5 + $0xb0] sm:$0xff] %v706_v7  ;;  %v688_v18 = vmax.f32 %v656_v10, 0.0  ;;  %v704_v19 = vmax.f32 %v672_v11, 0.0  ;;  %v979_v20 = vpop.f32.mrf.mxu0  ;;  %v995_v21 = vpop.f32.mrf.mxu1 }
 0x130   : > { %v691_v22 = vmax.f32 %v659_v14, 0.0  ;;  %v707_v23 = vmax.f32 %v675_v15, 0.0  ;;  %v657_v25 = vadd.f32 %v1444_v26, %v620_v16  ;;  %v673_v27 = vadd.f32 %v1444_v26, %v636_v17 }
 0x131   : > { %720 = vst [vmem:[%s1457_s5 + $0x20] sm:$0xff] %v688_v18  ;;  %736 = vst [vmem:[%s1457_s5 + $0xa0] sm:$0xff] %v704_v19  ;;  %v625_v28 = vmul.f32 %v979_v20, %v1439_v24  ;;  %v641_v29 = vmul.f32 %v995_v21, %v1439_v24  ;;  %v515_v30 = vpop.f32.mrf.mxu0  ;;  %v579_v31 = vpop.f32.mrf.mxu1 }
 0x132   : > { %723 = vst [vmem:[%s1457_s5 + $0x38] sm:$0xff] %v691_v22  ;;  %739 = vst [vmem:[%s1457_s5 + $0xb8] sm:$0xff] %v707_v23  ;;  %v689_v32 = vmax.f32 %v657_v25, 0.0  ;;  %v705_v33 = vmax.f32 %v673_v27, 0.0  ;;  %v623_v34 = vmul.f32 %v1439_v24, %v515_v30  ;;  %v639_v35 = vmul.f32 %v1439_v24, %v579_v31 }
 0x133   : > { %v662_v36 = vadd.f32 %v1444_v26, %v625_v28  ;;  %v678_v37 = vadd.f32 %v1444_v26, %v641_v29  ;;  %v980_v38 = vpop.f32.mrf.mxu0  ;;  %v996_v39 = vpop.f32.mrf.mxu1 }
 0x134   : > { %721 = vst [vmem:[%s1457_s5 + $0x28] sm:$0xff] %v689_v32  ;;  %737 = vst [vmem:[%s1457_s5 + $0xa8] sm:$0xff] %v705_v33  ;;  %v660_v40 = vadd.f32 %v1444_v26, %v623_v34  ;;  %v676_v41 = vadd.f32 %v1444_v26, %v639_v35  ;;  %v626_v42 = vmul.f32 %v980_v38, %v1439_v24 }
 0x135   : > { %v642_v43 = vmul.f32 %v996_v39, %v1439_v24  ;;  %v694_v44 = vmax.f32 %v662_v36, 0.0  ;;  %v710_v45 = vmax.f32 %v678_v37, 0.0  ;;  %v518_v46 = vpop.f32.mrf.mxu0  ;;  %v582_v47 = vpop.f32.mrf.mxu1 }
 0x136   : > { %v692_v48 = vmax.f32 %v660_v40, 0.0  ;;  %v708_v49 = vmax.f32 %v676_v41, 0.0  ;;  %v663_v50 = vadd.f32 %v1444_v26, %v626_v42  ;;  %v624_v52 = vmul.f32 %v1439_v24, %v518_v46 }
 0x137   : > { %v679_v51 = vadd.f32 %v1444_v26, %v642_v43  ;;  %726 = vst [vmem:[%s1457_s5 + $0x50] sm:$0xff] %v694_v44  ;;  %742 = vst [vmem:[%s1457_s5 + $0xd0] sm:$0xff] %v710_v45  ;;  %v640_v53 = vmul.f32 %v1439_v24, %v582_v47  ;;  %v983_v54 = vpop.f32.mrf.mxu0  ;;  %v999_v55 = vpop.f32.mrf.mxu1 }
 0x138   : > { %724 = vst [vmem:[%s1457_s5 + $0x40] sm:$0xff] %v692_v48  ;;  %740 = vst [vmem:[%s1457_s5 + $0xc0] sm:$0xff] %v708_v49  ;;  %v695_v56 = vmax.f32 %v663_v50, 0.0  ;;  %v629_v58 = vmul.f32 %v983_v54, %v1439_v24  ;;  %v645_v59 = vmul.f32 %v999_v55, %v1439_v24  ;;  %v661_v60 = vadd.f32 %v1444_v26, %v624_v52 }
 0x139   : > { %v711_v57 = vmax.f32 %v679_v51, 0.0  ;;  %v677_v61 = vadd.f32 %v1444_v26, %v640_v53  ;;  %v531_v62 = vpop.f32.mrf.mxu0  ;;  %v595_v63 = vpop.f32.mrf.mxu1 }
 0x13a   : > { %727 = vst [vmem:[%s1457_s5 + $0x58] sm:$0xff] %v695_v56  ;;  %v666_v0 = vadd.f32 %v1444_v26, %v629_v58  ;;  %v682_v1 = vadd.f32 %v1444_v26, %v645_v59  ;;  %v627_v2 = vmul.f32 %v1439_v24, %v531_v62  ;;  %v643_v3 = vmul.f32 %v1439_v24, %v595_v63 }
 0x13b   : > { %743 = vst [vmem:[%s1457_s5 + $0xd8] sm:$0xff] %v711_v57  ;;  %v693_v4 = vmax.f32 %v661_v60, 0.0  ;;  %v709_v5 = vmax.f32 %v677_v61, 0.0  ;;  %v984_v6 = vpop.f32.mrf.mxu0  ;;  %v1000_v7 = vpop.f32.mrf.mxu1 }
 0x13c   : > { %v698_v8 = vmax.f32 %v666_v0, 0.0  ;;  %v714_v9 = vmax.f32 %v682_v1, 0.0  ;;  %v664_v10 = vadd.f32 %v1444_v26, %v627_v2  ;;  %v680_v11 = vadd.f32 %v1444_v26, %v643_v3 }
 0x13d   : > { %725 = vst [vmem:[%s1457_s5 + $0x48] sm:$0xff] %v693_v4  ;;  %741 = vst [vmem:[%s1457_s5 + $0xc8] sm:$0xff] %v709_v5  ;;  %v630_v12 = vmul.f32 %v984_v6, %v1439_v24  ;;  %v646_v13 = vmul.f32 %v1000_v7, %v1439_v24  ;;  %v534_v14 = vpop.f32.mrf.mxu0  ;;  %v598_v15 = vpop.f32.mrf.mxu1 }
 0x13e   : > { %730 = vst [vmem:[%s1457_s5 + $0x70] sm:$0xff] %v698_v8  ;;  %746 = vst [vmem:[%s1457_s5 + $0xf0] sm:$0xff] %v714_v9  ;;  %v696_v16 = vmax.f32 %v664_v10, 0.0  ;;  %v712_v17 = vmax.f32 %v680_v11, 0.0  ;;  %v628_v18 = vmul.f32 %v1439_v24, %v534_v14  ;;  %v644_v19 = vmul.f32 %v1439_v24, %v598_v15 }
 0x13f   : > { %v667_v20 = vadd.f32 %v1444_v26, %v630_v12  ;;  %v683_v21 = vadd.f32 %v1444_v26, %v646_v13 }
 0x140   : > { %728 = vst [vmem:[%s1457_s5 + $0x60] sm:$0xff] %v696_v16  ;;  %744 = vst [vmem:[%s1457_s5 + $0xe0] sm:$0xff] %v712_v17  ;;  %v665_v22 = vadd.f32 %v1444_v26, %v628_v18  ;;  %v681_v23 = vadd.f32 %v1444_v26, %v644_v19 }
 0x141   : > { %v699_v25 = vmax.f32 %v667_v20, 0.0  ;;  %v715_v27 = vmax.f32 %v683_v21, 0.0 }
 0x142   : > { %v697_v24 = vmax.f32 %v665_v22, 0.0  ;;  %v713_v28 = vmax.f32 %v681_v23, 0.0 }
 0x143   : > { %731 = vst [vmem:[%s1457_s5 + $0x78] sm:$0xff] %v699_v25  ;;  %747 = vst [vmem:[%s1457_s5 + $0xf8] sm:$0xff] %v715_v27 }
 0x144   : > { %729 = vst [vmem:[%s1457_s5 + $0x68] sm:$0xff] %v697_v24  ;;  %745 = vst [vmem:[%s1457_s5 + $0xe8] sm:$0xff] %v713_v28 }
 0x145   : > { %1185 = shalt.err (!%p1182_p5)
}
 0x146   : > { %s1186_s27 = scalar_lea.hbm %s1546_s15, 4096  ;;  %s1190_s24 = scalar_lea.hbm %s1603_s3, 8192 }
 0x147   : > { %p1187_p7 = scmp.ne.s32.totalorder %s1546_s15, %s1186_s27  ;;  %p1191_p9 = scmp.lt.s32.totalorder %s1546_s15, %s1603_s3 }
 0x148   : > { %p1192_p11 = scmp.lt.s32.totalorder %s1190_s24, %s1186_s27 }
 0x149   : > { %p1188_p4 = pnand %p1187_p7, %p1375_p13 }
 0x14a   : > { %p1193_p10 = por %p1192_p11, %p1191_p9 }
 0x14b   : > { %p1189_p6 = pneg %p1188_p4 }
 0x14d   : > { %p1194_p1 = pnand %p1193_p10, %p1189_p6 }
 0x14f   : > { %1197 = shalt.err (!%p1194_p1)
}
 0x150   : > { %s1263_s5 = smov 128   ;;  %s1264_s6 = smov 8  }
 0x151   : > { %1023 = dma.vmem_to_hbm [thread:$0]  (%p1375_p13), %s1548_s21, 4096, %s1546_s15, %s749_s25, %s1263_s5, %s1263_s5, %s1264_s6  }
 0x152 PF: > { %s781_s10 = sand.u32 1, %s1236_s12   ;;  %p1619_p8 = scmp.ne.s32.totalorder %s1610_s23, 0 }
 0x153   : > { %p1620_p12 = scmp.ge.s32.totalorder %s1256_s17, 2  ;;  %s782_s7 = scalar_lea.sflag [#allocation4], %s781_s10 }
 0x155   : > { %p1034_p0 = pnand %p1620_p12, %p1619_p8 }
 0x157   : > { %p1035_p2 = pneg %p1034_p0 }
 0x159   : > { %1231 = dma.done.wait (%p1035_p2), %s782_s7, 4096  }
 0x15a   : > { %1233 = vsyncadd (%p1035_p2), %s782_s7, 4294963200  ;;  %s20_s17 = sadd.s32 1, %s1256_s17   ;;  %s1621_s12 = smov %s1240_s13 }
 0x15b   : > { %p17_p3 = scmp.ge.s32.totalorder %s20_s17, 4   ;;  %s1622_s13 = smov %s1244_s14 }
 0x15c   : > { %s1623_s14 = smov %s1384_s19  ;;  %s1624_s15 = smov %s1252_s16 }
 0x15d   : > { %s1625_s16 = smov %s1627_s28  ;;  %19 = sbr.rel (!%p17_p3) target bundleno = 7 (0x7), region = 86 }
 0x162   :  { %787 = vsyncpa [#allocation3], 1 }
 0x163   :  { %789 = vsyncpa [#allocation3 + $0x1], 1 }
 0x164   :  { %790 = vsyncpa [#allocation6], 1 }
 0x165   :  { %791 = vsyncpa [#allocation4], 1 }
 0x166   :  { %793 = vsyncpa [#allocation4 + $0x1], 1 }

</bundles_post_ra>
